<compile_context>
chip_gen: v7x
topology: tpu7x:2x2x1
jax: 0.10.0
libtpu: 0.0.40
codegen_flags: <defaults>
</compile_context>

<pallas_src>
import functools

import jax
import jax.numpy as jnp
from jax.experimental import pallas as pl
from jax.experimental.pallas import tpu as pltpu

LANE = 128      # lane width (last-dim tile)
SUBLANE = 16    # safe sublane multiple for bf16 inputs (also covers f32's 8)


def _round_up(x, m):
    return (x + m - 1) // m * m


# ----------------------------------------------------------------------------
# Kernel: one batch tile, full ensemble in one invocation.
# ----------------------------------------------------------------------------
def _critic_kernel(obs_ref, w1_ref, b1_ref, w2_ref, b2_ref, w3_ref, b3_ref,
                   out_ref, *, n_q, H1):
    # Layer 1, all nets at once: [TB, OD] @ [OD, n_q*H1], f32 accumulate.
    h1 = jnp.dot(obs_ref[...], w1_ref[...], preferred_element_type=jnp.float32)
    h1 = jnp.maximum(h1 + b1_ref[...], 0.0)                  # bias + ReLU (f32)

    # Layers 2/3 per net (static Python loop over 128-aligned slabs).
    q_min = None
    for i in range(n_q):
        hi = h1[:, i * H1:(i + 1) * H1].astype(jnp.bfloat16)  # clean lane-tile slab
        h2 = jnp.dot(hi, w2_ref[i], preferred_element_type=jnp.float32)
        h2 = jnp.maximum(h2 + b2_ref[i], 0.0).astype(jnp.bfloat16)
        qi = jnp.dot(h2, w3_ref[i], preferred_element_type=jnp.float32) + b3_ref[i]
        q_min = qi if q_min is None else jnp.minimum(q_min, qi)
    out_ref[...] = q_min.astype(out_ref.dtype)


# ----------------------------------------------------------------------------
# One-time parameter packing (per parameter update, NOT per forward call).
# ----------------------------------------------------------------------------
def pack_params(params):
    """Pad feature dims to 128 lanes, cast weights to bf16, keep biases f32.

    Returns (w1p [OD, n_q*H1] bf16, b1p [1, n_q*H1] f32,
             w2p [n_q, H1, H2] bf16, b2p [n_q, 1, H2] f32,
             w3p [n_q, H2, AD] bf16, b3p [n_q, 1, AD] f32).
    """
    w1, b1, w2, b2, w3, b3 = params
    n_q, obs_dim, h1 = w1.shape
    h2 = w2.shape[2]
    action_dim = w3.shape[2]

    OD = _round_up(obs_dim, LANE)
    H1 = _round_up(h1, LANE)
    H2 = _round_up(h2, LANE)
    AD = _round_up(action_dim, LANE)

    # Layer 1: shared input, concatenated outputs -> one wide MXU matmul.
    w1p = jnp.pad(w1, ((0, 0), (0, OD - obs_dim), (0, H1 - h1)))
    w1p = jnp.transpose(w1p, (1, 0, 2)).reshape(OD, n_q * H1).astype(jnp.bfloat16)
    b1p = jnp.pad(b1, ((0, 0), (0, 0), (0, H1 - h1))).reshape(1, n_q * H1)

    # Layers 2/3: per-net padded batched weights (no block-diagonal packing).
    w2p = jnp.pad(w2, ((0, 0), (0, H1 - h1), (0, H2 - h2))).astype(jnp.bfloat16)
    b2p = jnp.pad(b2, ((0, 0), (0, 0), (0, H2 - h2)))
    w3p = jnp.pad(w3, ((0, 0), (0, H2 - h2), (0, AD - action_dim))).astype(jnp.bfloat16)
    b3p = jnp.pad(b3, ((0, 0), (0, 0), (0, AD - action_dim)))
    return (w1p, b1p, w2p, b2p, w3p, b3p)


def _make_specs(dims, tb, single_buffer_weights):
    n_q, OD, H1, H2, AD = dims
    # Grid-invariant operands (index_map constant across the batch grid):
    # request single buffering to halve their VMEM footprint.
    wmode = {}
    if single_buffer_weights:
        wmode = dict(pipeline_mode=pl.Buffered(1))
    in_specs = [
        pl.BlockSpec((tb, OD), lambda i: (i, 0)),                       # obs tile
        pl.BlockSpec((OD, n_q * H1), lambda i: (0, 0), **wmode),        # W1
        pl.BlockSpec((1, n_q * H1), lambda i: (0, 0), **wmode),         # b1
        pl.BlockSpec((n_q, H1, H2), lambda i: (0, 0, 0), **wmode),      # W2 per-net
        pl.BlockSpec((n_q, 1, H2), lambda i: (0, 0, 0), **wmode),       # b2
        pl.BlockSpec((n_q, H2, AD), lambda i: (0, 0, 0), **wmode),      # W3 per-net
        pl.BlockSpec((n_q, 1, AD), lambda i: (0, 0, 0), **wmode),       # b3
    ]
    out_spec = pl.BlockSpec((tb, AD), lambda i: (i, 0))                 # lane-dense out
    return in_specs, out_spec


# ----------------------------------------------------------------------------
# Forward wrapper: Q(obs) = min_i MLP_i(obs)
# ----------------------------------------------------------------------------
def discrete_critic_forward(obs, packed, action_dim, *, tile_b=1024):
    """obs: [B, obs_dim] f32; packed = pack_params(params); -> [B, action_dim] f32.

    use_target_net=True corresponds to calling this with the target nets'
    packed params (same kernel, different arrays).
    """
    w1p, b1p, w2p, b2p, w3p, b3p = packed
    OD, nH1 = w1p.shape
    n_q, H1, H2 = w2p.shape
    AD = w3p.shape[2]
    batch, obs_dim = obs.shape

    # Batch tiling: big tiles to amortize per-grid-step overhead; >=2 balanced
    # tiles when the batch is large so the "parallel" axis splits across the
    # two v7x TensorCores (harmless single tile on small batches / v5e / v6e).
    b_sub = _round_up(batch, SUBLANE)
    if b_sub <= 256:
        tb = b_sub
    else:
        tb = min(tile_b, _round_up((b_sub + 1) // 2, 256))
    b_pad = _round_up(b_sub, tb)
    grid = (b_pad // tb,)

    obs_p = jnp.pad(obs, ((0, b_pad - batch), (0, OD - obs_dim))).astype(jnp.bfloat16)

    # Explicit scoped-VMEM budget (v5e default scoped limit is only 16 MiB).
    weight_bytes = (w1p.size + w2p.size + w3p.size) * 2 \
                 + (b1p.size + b2p.size + b3p.size) * 4
    act_bytes = tb * (OD * 2 + nH1 * 4 + H2 * 4 + AD * 4) * 2
    vmem_limit = int(min(64 << 20, max(32 << 20, 2 * (weight_bytes + act_bytes))))

    kernel = functools.partial(_critic_kernel, n_q=n_q, H1=H1)

    def run(single_buffer_weights):
        in_specs, out_spec = _make_specs((n_q, OD, H1, H2, AD), tb,
                                         single_buffer_weights)
        return pl.pallas_call(
            kernel,
            out_shape=jax.ShapeDtypeStruct((b_pad, AD), jnp.float32),
            grid=grid,
            in_specs=in_specs,
            out_specs=out_spec,
            compiler_params=pltpu.CompilerParams(
                dimension_semantics=("parallel",),
                vmem_limit_bytes=vmem_limit),
        )(obs_p, w1p, b1p, w2p, b2p, w3p, b3p)

    try:
        out = run(single_buffer_weights=True)
    except Exception:
        # pipeline_mode=pl.Buffered(1) unsupported on this JAX/Mosaic version:
        # fall back to default double-buffered weight operands.
        out = run(single_buffer_weights=False)

    return out[:batch, :action_dim]


# ----------------------------------------------------------------------------
# Parameters / reference
# ----------------------------------------------------------------------------
def init_params(key, n_q, obs_dim, hidden_dims, action_dim):
    """Synthetic params matching MLP(obs_dim, action_dim, hidden_dims), n_q copies."""
    h1, h2 = hidden_dims
    ks = jax.random.split(key, 6)
    scale = 0.1
    w1 = scale * jax.random.normal(ks[0], (n_q, obs_dim, h1), jnp.float32)
    b1 = scale * jax.random.normal(ks[1], (n_q, 1, h1), jnp.float32)
    w2 = scale * jax.random.normal(ks[2], (n_q, h1, h2), jnp.float32)
    b2 = scale * jax.random.normal(ks[3], (n_q, 1, h2), jnp.float32)
    w3 = scale * jax.random.normal(ks[4], (n_q, h2, action_dim), jnp.float32)
    b3 = scale * jax.random.normal(ks[5], (n_q, 1, action_dim), jnp.float32)
    return (w1, b1, w2, b2, w3, b3)


def reference_forward(obs, params):
    """Pure-f32 reference: torch.stack([net(obs) for net in q_nets], 1).min(1)."""
    w1, b1, w2, b2, w3, b3 = params
    h = jnp.maximum(jnp.einsum('bd,ndh->nbh', obs, w1) + b1, 0.0)
    h = jnp.maximum(jnp.einsum('nbh,nhk->nbk', h, w2) + b2, 0.0)
    q = jnp.einsum('nbk,nka->nba', h, w3) + b3
    return q.min(axis=0)


if __name__ == "__main__":
    # Small shapes consistent with the module: obs_dim=32, hidden=[32,32],
    # action_dim=8, n_q_nets=2 (default ensemble size), batch=2.
    key = jax.random.PRNGKey(0)
    k_param, k_obs = jax.random.split(key)

    n_q, obs_dim, hidden_dims, action_dim, batch = 2, 32, [32, 32], 8, 2

    # target_q_nets are a hard copy of q_nets at init; forward(use_target_net=False)
    # uses q_nets, so one packed parameter set suffices here (target nets would
    # reuse the same kernel with their own pack_params output).
    # TODO(synk): update_target_parameters (soft/hard target update) and the
    # return_q_min=False path (full [B, n_q, A] stack) are not kernelized.
    params = init_params(k_param, n_q, obs_dim, hidden_dims, action_dim)
    packed = pack_params(params)          # packed ONCE, reused across forwards
    obs = jax.random.normal(k_obs, (batch, obs_dim), jnp.float32)

    q_min = discrete_critic_forward(obs, packed, action_dim)
    q_min = jax.block_until_ready(q_min)

    q_ref = reference_forward(obs, params)
    assert q_min.shape == (batch, action_dim)
    # bf16 MXU operands with f32 accumulation -> relaxed tolerance vs pure-f32 ref.
    assert jnp.allclose(q_min, q_ref, atol=1e-2, rtol=1e-2), (
        f"max abs err = {jnp.max(jnp.abs(q_min - q_ref))}")

    print("KERNEL_OK")
</pallas_src>

<mosaic_0001>
module attributes {stable_mosaic.version = 11 : i64} {
  func.func @_critic_kernel(%arg0: i32, %arg1: memref<16x128xbf16, #tpu.memory_space<vmem>>, %arg2: memref<128x256xbf16, #tpu.memory_space<vmem>>, %arg3: memref<1x256xf32, #tpu.memory_space<vmem>>, %arg4: memref<2x128x128xbf16, #tpu.memory_space<vmem>>, %arg5: memref<2x1x128xf32, #tpu.memory_space<vmem>>, %arg6: memref<2x128x128xbf16, #tpu.memory_space<vmem>>, %arg7: memref<2x1x128xf32, #tpu.memory_space<vmem>>, %arg8: memref<16x128xf32, #tpu.memory_space<vmem>>) attributes {dimension_semantics = [#tpu.dimension_semantics<parallel>], iteration_bounds = array<i64: 1>, scalar_prefetch = 0 : i64, scratch_operands = 0 : i64, tpu.core_type = #tpu.core_type<tc>, window_params = [{transform_indices = @transform_0, window_bounds = array<i64: 16, 128>}, {pipeline_mode = #tpu.pipeline_mode<synchronous>, transform_indices = @transform_1, window_bounds = array<i64: 128, 256>}, {pipeline_mode = #tpu.pipeline_mode<synchronous>, transform_indices = @transform_2, window_bounds = array<i64: 1, 256>}, {pipeline_mode = #tpu.pipeline_mode<synchronous>, transform_indices = @transform_3, window_bounds = array<i64: 2, 128, 128>}, {pipeline_mode = #tpu.pipeline_mode<synchronous>, transform_indices = @transform_4, window_bounds = array<i64: 2, 1, 128>}, {pipeline_mode = #tpu.pipeline_mode<synchronous>, transform_indices = @transform_5, window_bounds = array<i64: 2, 128, 128>}, {pipeline_mode = #tpu.pipeline_mode<synchronous>, transform_indices = @transform_6, window_bounds = array<i64: 2, 1, 128>}, {transform_indices = @transform_7, window_bounds = array<i64: 16, 128>}]} {
    %c0 = arith.constant 0 : index
    %c0_0 = arith.constant 0 : index
    %0 = vector.load %arg1[%c0, %c0_0] : memref<16x128xbf16, #tpu.memory_space<vmem>>, vector<16x128xbf16>
    %c0_1 = arith.constant 0 : index
    %c0_2 = arith.constant 0 : index
    %1 = vector.load %arg2[%c0_1, %c0_2] : memref<128x256xbf16, #tpu.memory_space<vmem>>, vector<128x256xbf16>
    %cst = arith.constant dense<0.000000e+00> : vector<16x256xf32>
    %2 = tpu.matmul %0, %1, %cst {dimension_numbers = #tpu.dot_dimension_numbers<[1], [0], [0], [1], [0, 0, 1, 1], [], []>} : vector<16x128xbf16>, vector<128x256xbf16>, vector<16x256xf32> -> vector<16x256xf32>
    %c0_3 = arith.constant 0 : index
    %c0_4 = arith.constant 0 : index
    %3 = vector.load %arg3[%c0_3, %c0_4] : memref<1x256xf32, #tpu.memory_space<vmem>>, vector<1x256xf32>
    %4 = vector.broadcast %3 : vector<1x256xf32> to vector<16x256xf32>
    %5 = arith.addf %2, %4 : vector<16x256xf32>
    %cst_5 = arith.constant 0.000000e+00 : f32
    %6 = vector.broadcast %cst_5 : f32 to vector<16x256xf32>
    %7 = arith.maximumf %5, %6 : vector<16x256xf32>
    %8 = vector.extract_strided_slice %7 {offsets = [0, 0], sizes = [16, 128], strides = [1, 1]} : vector<16x256xf32> to vector<16x128xf32>
    %9 = arith.truncf %8 : vector<16x128xf32> to vector<16x128xbf16>
    %c0_6 = arith.constant 0 : index
    %c0_7 = arith.constant 0 : index
    %c0_8 = arith.constant 0 : index
    %10 = vector.load %arg4[%c0_6, %c0_7, %c0_8] : memref<2x128x128xbf16, #tpu.memory_space<vmem>>, vector<1x128x128xbf16>
    %11 = vector.shape_cast %10 : vector<1x128x128xbf16> to vector<128x128xbf16>
    %cst_9 = arith.constant dense<0.000000e+00> : vector<16x128xf32>
    %12 = tpu.matmul %9, %11, %cst_9 {dimension_numbers = #tpu.dot_dimension_numbers<[1], [0], [0], [1], [0, 0, 1, 1], [], []>} : vector<16x128xbf16>, vector<128x128xbf16>, vector<16x128xf32> -> vector<16x128xf32>
    %c0_10 = arith.constant 0 : index
    %c0_11 = arith.constant 0 : index
    %c0_12 = arith.constant 0 : index
    %13 = vector.load %arg5[%c0_10, %c0_11, %c0_12] : memref<2x1x128xf32, #tpu.memory_space<vmem>>, vector<1x1x128xf32>
    %14 = vector.shape_cast %13 : vector<1x1x128xf32> to vector<1x128xf32>
    %15 = vector.broadcast %14 : vector<1x128xf32> to vector<16x128xf32>
    %16 = arith.addf %12, %15 : vector<16x128xf32>
    %cst_13 = arith.constant 0.000000e+00 : f32
    %17 = vector.broadcast %cst_13 : f32 to vector<16x128xf32>
    %18 = arith.maximumf %16, %17 : vector<16x128xf32>
    %19 = arith.truncf %18 : vector<16x128xf32> to vector<16x128xbf16>
    %c0_14 = arith.constant 0 : index
    %c0_15 = arith.constant 0 : index
    %c0_16 = arith.constant 0 : index
    %20 = vector.load %arg6[%c0_14, %c0_15, %c0_16] : memref<2x128x128xbf16, #tpu.memory_space<vmem>>, vector<1x128x128xbf16>
    %21 = vector.shape_cast %20 : vector<1x128x128xbf16> to vector<128x128xbf16>
    %cst_17 = arith.constant dense<0.000000e+00> : vector<16x128xf32>
    %22 = tpu.matmul %19, %21, %cst_17 {dimension_numbers = #tpu.dot_dimension_numbers<[1], [0], [0], [1], [0, 0, 1, 1], [], []>} : vector<16x128xbf16>, vector<128x128xbf16>, vector<16x128xf32> -> vector<16x128xf32>
    %c0_18 = arith.constant 0 : index
    %c0_19 = arith.constant 0 : index
    %c0_20 = arith.constant 0 : index
    %23 = vector.load %arg7[%c0_18, %c0_19, %c0_20] : memref<2x1x128xf32, #tpu.memory_space<vmem>>, vector<1x1x128xf32>
    %24 = vector.shape_cast %23 : vector<1x1x128xf32> to vector<1x128xf32>
    %25 = vector.broadcast %24 : vector<1x128xf32> to vector<16x128xf32>
    %26 = arith.addf %22, %25 : vector<16x128xf32>
    %27 = vector.extract_strided_slice %7 {offsets = [0, 128], sizes = [16, 128], strides = [1, 1]} : vector<16x256xf32> to vector<16x128xf32>
    %28 = arith.truncf %27 : vector<16x128xf32> to vector<16x128xbf16>
    %c1 = arith.constant 1 : index
    %c0_21 = arith.constant 0 : index
    %c0_22 = arith.constant 0 : index
    %29 = vector.load %arg4[%c1, %c0_21, %c0_22] : memref<2x128x128xbf16, #tpu.memory_space<vmem>>, vector<1x128x128xbf16>
    %30 = vector.shape_cast %29 : vector<1x128x128xbf16> to vector<128x128xbf16>
    %cst_23 = arith.constant dense<0.000000e+00> : vector<16x128xf32>
    %31 = tpu.matmul %28, %30, %cst_23 {dimension_numbers = #tpu.dot_dimension_numbers<[1], [0], [0], [1], [0, 0, 1, 1], [], []>} : vector<16x128xbf16>, vector<128x128xbf16>, vector<16x128xf32> -> vector<16x128xf32>
    %c1_24 = arith.constant 1 : index
    %c0_25 = arith.constant 0 : index
    %c0_26 = arith.constant 0 : index
    %32 = vector.load %arg5[%c1_24, %c0_25, %c0_26] : memref<2x1x128xf32, #tpu.memory_space<vmem>>, vector<1x1x128xf32>
    %33 = vector.shape_cast %32 : vector<1x1x128xf32> to vector<1x128xf32>
    %34 = vector.broadcast %33 : vector<1x128xf32> to vector<16x128xf32>
    %35 = arith.addf %31, %34 : vector<16x128xf32>
    %cst_27 = arith.constant 0.000000e+00 : f32
    %36 = vector.broadcast %cst_27 : f32 to vector<16x128xf32>
    %37 = arith.maximumf %35, %36 : vector<16x128xf32>
    %38 = arith.truncf %37 : vector<16x128xf32> to vector<16x128xbf16>
    %c1_28 = arith.constant 1 : index
    %c0_29 = arith.constant 0 : index
    %c0_30 = arith.constant 0 : index
    %39 = vector.load %arg6[%c1_28, %c0_29, %c0_30] : memref<2x128x128xbf16, #tpu.memory_space<vmem>>, vector<1x128x128xbf16>
    %40 = vector.shape_cast %39 : vector<1x128x128xbf16> to vector<128x128xbf16>
    %cst_31 = arith.constant dense<0.000000e+00> : vector<16x128xf32>
    %41 = tpu.matmul %38, %40, %cst_31 {dimension_numbers = #tpu.dot_dimension_numbers<[1], [0], [0], [1], [0, 0, 1, 1], [], []>} : vector<16x128xbf16>, vector<128x128xbf16>, vector<16x128xf32> -> vector<16x128xf32>
    %c1_32 = arith.constant 1 : index
    %c0_33 = arith.constant 0 : index
    %c0_34 = arith.constant 0 : index
    %42 = vector.load %arg7[%c1_32, %c0_33, %c0_34] : memref<2x1x128xf32, #tpu.memory_space<vmem>>, vector<1x1x128xf32>
    %43 = vector.shape_cast %42 : vector<1x1x128xf32> to vector<1x128xf32>
    %44 = vector.broadcast %43 : vector<1x128xf32> to vector<16x128xf32>
    %45 = arith.addf %41, %44 : vector<16x128xf32>
    %46 = arith.minimumf %26, %45 : vector<16x128xf32>
    %c0_35 = arith.constant 0 : index
    %c0_36 = arith.constant 0 : index
    %47 = vector.load %arg8[%c0_35, %c0_36] : memref<16x128xf32, #tpu.memory_space<vmem>>, vector<16x128xf32>
    tpu.vector_store %arg8[%c0_35, %c0_36], %46 {strides = array<i32>} : memref<16x128xf32, #tpu.memory_space<vmem>>, vector<16x128xf32>,
    return
  }
  func.func @transform_0(%arg0: i32) -> (i32, i32) {
    %c0_i32 = arith.constant 0 : i32
    %c0_i32_0 = arith.constant 0 : i32
    return %arg0, %c0_i32 : i32, i32
  }
  func.func @transform_1(%arg0: i32) -> (i32, i32) {
    %c0_i32 = arith.constant 0 : i32
    %c0_i32_0 = arith.constant 0 : i32
    %c0_i32_1 = arith.constant 0 : i32
    return %c0_i32, %c0_i32_0 : i32, i32
  }
  func.func @transform_2(%arg0: i32) -> (i32, i32) {
    %c0_i32 = arith.constant 0 : i32
    %c0_i32_0 = arith.constant 0 : i32
    %c0_i32_1 = arith.constant 0 : i32
    return %c0_i32, %c0_i32_0 : i32, i32
  }
  func.func @transform_3(%arg0: i32) -> (i32, i32, i32) {
    %c0_i32 = arith.constant 0 : i32
    %c0_i32_0 = arith.constant 0 : i32
    %c0_i32_1 = arith.constant 0 : i32
    %c0_i32_2 = arith.constant 0 : i32
    return %c0_i32, %c0_i32_0, %c0_i32_1 : i32, i32, i32
  }
  func.func @transform_4(%arg0: i32) -> (i32, i32, i32) {
    %c0_i32 = arith.constant 0 : i32
    %c0_i32_0 = arith.constant 0 : i32
    %c0_i32_1 = arith.constant 0 : i32
    %c0_i32_2 = arith.constant 0 : i32
    return %c0_i32, %c0_i32_0, %c0_i32_1 : i32, i32, i32
  }
  func.func @transform_5(%arg0: i32) -> (i32, i32, i32) {
    %c0_i32 = arith.constant 0 : i32
    %c0_i32_0 = arith.constant 0 : i32
    %c0_i32_1 = arith.constant 0 : i32
    %c0_i32_2 = arith.constant 0 : i32
    return %c0_i32, %c0_i32_0, %c0_i32_1 : i32, i32, i32
  }
  func.func @transform_6(%arg0: i32) -> (i32, i32, i32) {
    %c0_i32 = arith.constant 0 : i32
    %c0_i32_0 = arith.constant 0 : i32
    %c0_i32_1 = arith.constant 0 : i32
    %c0_i32_2 = arith.constant 0 : i32
    return %c0_i32, %c0_i32_0, %c0_i32_1 : i32, i32, i32
  }
  func.func @transform_7(%arg0: i32) -> (i32, i32) {
    %c0_i32 = arith.constant 0 : i32
    %c0_i32_0 = arith.constant 0 : i32
    return %arg0, %c0_i32 : i32, i32
  }
}

module attributes {stable_mosaic.version = 11 : i64} {
  func.func @_critic_kernel(%arg0: i32, %arg1: memref<16x128xbf16, #tpu.memory_space<vmem>>, %arg2: memref<128x256xbf16, #tpu.memory_space<vmem>>, %arg3: memref<1x256xf32, #tpu.memory_space<vmem>>, %arg4: memref<2x128x128xbf16, #tpu.memory_space<vmem>>, %arg5: memref<2x1x128xf32, #tpu.memory_space<vmem>>, %arg6: memref<2x128x128xbf16, #tpu.memory_space<vmem>>, %arg7: memref<2x1x128xf32, #tpu.memory_space<vmem>>, %arg8: memref<16x128xf32, #tpu.memory_space<vmem>>) attributes {dimension_semantics = [#tpu.dimension_semantics<parallel>], iteration_bounds = array<i64: 1>, scalar_prefetch = 0 : i64, scratch_operands = 0 : i64, tpu.core_type = #tpu.core_type<tc>, window_params = [{transform_indices = @transform_0, window_bounds = array<i64: 16, 128>}, {pipeline_mode = #tpu.pipeline_mode<synchronous>, transform_indices = @transform_1, window_bounds = array<i64: 128, 256>}, {pipeline_mode = #tpu.pipeline_mode<synchronous>, transform_indices = @transform_2, window_bounds = array<i64: 1, 256>}, {pipeline_mode = #tpu.pipeline_mode<synchronous>, transform_indices = @transform_3, window_bounds = array<i64: 2, 128, 128>}, {pipeline_mode = #tpu.pipeline_mode<synchronous>, transform_indices = @transform_4, window_bounds = array<i64: 2, 1, 128>}, {pipeline_mode = #tpu.pipeline_mode<synchronous>, transform_indices = @transform_5, window_bounds = array<i64: 2, 128, 128>}, {pipeline_mode = #tpu.pipeline_mode<synchronous>, transform_indices = @transform_6, window_bounds = array<i64: 2, 1, 128>}, {transform_indices = @transform_7, window_bounds = array<i64: 16, 128>}]} {
    %c0 = arith.constant 0 : index
    %c0_0 = arith.constant 0 : index
    %0 = vector.load %arg1[%c0, %c0_0] : memref<16x128xbf16, #tpu.memory_space<vmem>>, vector<16x128xbf16>
    %c0_1 = arith.constant 0 : index
    %c0_2 = arith.constant 0 : index
    %1 = vector.load %arg2[%c0_1, %c0_2] : memref<128x256xbf16, #tpu.memory_space<vmem>>, vector<128x256xbf16>
    %cst = arith.constant dense<0.000000e+00> : vector<16x256xf32>
    %2 = tpu.matmul %0, %1, %cst {dimension_numbers = #tpu.dot_dimension_numbers<[1], [0], [0], [1], [0, 0, 1, 1], [], []>} : vector<16x128xbf16>, vector<128x256xbf16>, vector<16x256xf32> -> vector<16x256xf32>
    %c0_3 = arith.constant 0 : index
    %c0_4 = arith.constant 0 : index
    %3 = vector.load %arg3[%c0_3, %c0_4] : memref<1x256xf32, #tpu.memory_space<vmem>>, vector<1x256xf32>
    %4 = vector.broadcast %3 : vector<1x256xf32> to vector<16x256xf32>
    %5 = arith.addf %2, %4 : vector<16x256xf32>
    %cst_5 = arith.constant 0.000000e+00 : f32
    %6 = vector.broadcast %cst_5 : f32 to vector<16x256xf32>
    %7 = arith.maximumf %5, %6 : vector<16x256xf32>
    %8 = vector.extract_strided_slice %7 {offsets = [0, 0], sizes = [16, 128], strides = [1, 1]} : vector<16x256xf32> to vector<16x128xf32>
    %9 = arith.truncf %8 : vector<16x128xf32> to vector<16x128xbf16>
    %c0_6 = arith.constant 0 : index
    %c0_7 = arith.constant 0 : index
    %c0_8 = arith.constant 0 : index
    %10 = vector.load %arg4[%c0_6, %c0_7, %c0_8] : memref<2x128x128xbf16, #tpu.memory_space<vmem>>, vector<1x128x128xbf16>
    %11 = vector.shape_cast %10 : vector<1x128x128xbf16> to vector<128x128xbf16>
    %cst_9 = arith.constant dense<0.000000e+00> : vector<16x128xf32>
    %12 = tpu.matmul %9, %11, %cst_9 {dimension_numbers = #tpu.dot_dimension_numbers<[1], [0], [0], [1], [0, 0, 1, 1], [], []>} : vector<16x128xbf16>, vector<128x128xbf16>, vector<16x128xf32> -> vector<16x128xf32>
    %c0_10 = arith.constant 0 : index
    %c0_11 = arith.constant 0 : index
    %c0_12 = arith.constant 0 : index
    %13 = vector.load %arg5[%c0_10, %c0_11, %c0_12] : memref<2x1x128xf32, #tpu.memory_space<vmem>>, vector<1x1x128xf32>
    %14 = vector.shape_cast %13 : vector<1x1x128xf32> to vector<1x128xf32>
    %15 = vector.broadcast %14 : vector<1x128xf32> to vector<16x128xf32>
    %16 = arith.addf %12, %15 : vector<16x128xf32>
    %cst_13 = arith.constant 0.000000e+00 : f32
    %17 = vector.broadcast %cst_13 : f32 to vector<16x128xf32>
    %18 = arith.maximumf %16, %17 : vector<16x128xf32>
    %19 = arith.truncf %18 : vector<16x128xf32> to vector<16x128xbf16>
    %c0_14 = arith.constant 0 : index
    %c0_15 = arith.constant 0 : index
    %c0_16 = arith.constant 0 : index
    %20 = vector.load %arg6[%c0_14, %c0_15, %c0_16] : memref<2x128x128xbf16, #tpu.memory_space<vmem>>, vector<1x128x128xbf16>
    %21 = vector.shape_cast %20 : vector<1x128x128xbf16> to vector<128x128xbf16>
    %cst_17 = arith.constant dense<0.000000e+00> : vector<16x128xf32>
    %22 = tpu.matmul %19, %21, %cst_17 {dimension_numbers = #tpu.dot_dimension_numbers<[1], [0], [0], [1], [0, 0, 1, 1], [], []>} : vector<16x128xbf16>, vector<128x128xbf16>, vector<16x128xf32> -> vector<16x128xf32>
    %c0_18 = arith.constant 0 : index
    %c0_19 = arith.constant 0 : index
    %c0_20 = arith.constant 0 : index
    %23 = vector.load %arg7[%c0_18, %c0_19, %c0_20] : memref<2x1x128xf32, #tpu.memory_space<vmem>>, vector<1x1x128xf32>
    %24 = vector.shape_cast %23 : vector<1x1x128xf32> to vector<1x128xf32>
    %25 = vector.broadcast %24 : vector<1x128xf32> to vector<16x128xf32>
    %26 = arith.addf %22, %25 : vector<16x128xf32>
    %27 = vector.extract_strided_slice %7 {offsets = [0, 128], sizes = [16, 128], strides = [1, 1]} : vector<16x256xf32> to vector<16x128xf32>
    %28 = arith.truncf %27 : vector<16x128xf32> to vector<16x128xbf16>
    %c1 = arith.constant 1 : index
    %c0_21 = arith.constant 0 : index
    %c0_22 = arith.constant 0 : index
    %29 = vector.load %arg4[%c1, %c0_21, %c0_22] : memref<2x128x128xbf16, #tpu.memory_space<vmem>>, vector<1x128x128xbf16>
    %30 = vector.shape_cast %29 : vector<1x128x128xbf16> to vector<128x128xbf16>
    %cst_23 = arith.constant dense<0.000000e+00> : vector<16x128xf32>
    %31 = tpu.matmul %28, %30, %cst_23 {dimension_numbers = #tpu.dot_dimension_numbers<[1], [0], [0], [1], [0, 0, 1, 1], [], []>} : vector<16x128xbf16>, vector<128x128xbf16>, vector<16x128xf32> -> vector<16x128xf32>
    %c1_24 = arith.constant 1 : index
    %c0_25 = arith.constant 0 : index
    %c0_26 = arith.constant 0 : index
    %32 = vector.load %arg5[%c1_24, %c0_25, %c0_26] : memref<2x1x128xf32, #tpu.memory_space<vmem>>, vector<1x1x128xf32>
    %33 = vector.shape_cast %32 : vector<1x1x128xf32> to vector<1x128xf32>
    %34 = vector.broadcast %33 : vector<1x128xf32> to vector<16x128xf32>
    %35 = arith.addf %31, %34 : vector<16x128xf32>
    %cst_27 = arith.constant 0.000000e+00 : f32
    %36 = vector.broadcast %cst_27 : f32 to vector<16x128xf32>
    %37 = arith.maximumf %35, %36 : vector<16x128xf32>
    %38 = arith.truncf %37 : vector<16x128xf32> to vector<16x128xbf16>
    %c1_28 = arith.constant 1 : index
    %c0_29 = arith.constant 0 : index
    %c0_30 = arith.constant 0 : index
    %39 = vector.load %arg6[%c1_28, %c0_29, %c0_30] : memref<2x128x128xbf16, #tpu.memory_space<vmem>>, vector<1x128x128xbf16>
    %40 = vector.shape_cast %39 : vector<1x128x128xbf16> to vector<128x128xbf16>
    %cst_31 = arith.constant dense<0.000000e+00> : vector<16x128xf32>
    %41 = tpu.matmul %38, %40, %cst_31 {dimension_numbers = #tpu.dot_dimension_numbers<[1], [0], [0], [1], [0, 0, 1, 1], [], []>} : vector<16x128xbf16>, vector<128x128xbf16>, vector<16x128xf32> -> vector<16x128xf32>
    %c1_32 = arith.constant 1 : index
    %c0_33 = arith.constant 0 : index
    %c0_34 = arith.constant 0 : index
    %42 = vector.load %arg7[%c1_32, %c0_33, %c0_34] : memref<2x1x128xf32, #tpu.memory_space<vmem>>, vector<1x1x128xf32>
    %43 = vector.shape_cast %42 : vector<1x1x128xf32> to vector<1x128xf32>
    %44 = vector.broadcast %43 : vector<1x128xf32> to vector<16x128xf32>
    %45 = arith.addf %41, %44 : vector<16x128xf32>
    %46 = arith.minimumf %26, %45 : vector<16x128xf32>
    %c0_35 = arith.constant 0 : index
    %c0_36 = arith.constant 0 : index
    %47 = vector.load %arg8[%c0_35, %c0_36] : memref<16x128xf32, #tpu.memory_space<vmem>>, vector<16x128xf32>
    tpu.vector_store %arg8[%c0_35, %c0_36], %46 {strides = array<i32>} : memref<16x128xf32, #tpu.memory_space<vmem>>, vector<16x128xf32>,
    return
  }
  func.func @transform_0(%arg0: i32) -> (i32, i32) {
    %c0_i32 = arith.constant 0 : i32
    %c0_i32_0 = arith.constant 0 : i32
    return %arg0, %c0_i32 : i32, i32
  }
  func.func @transform_1(%arg0: i32) -> (i32, i32) {
    %c0_i32 = arith.constant 0 : i32
    %c0_i32_0 = arith.constant 0 : i32
    %c0_i32_1 = arith.constant 0 : i32
    return %c0_i32, %c0_i32_0 : i32, i32
  }
  func.func @transform_2(%arg0: i32) -> (i32, i32) {
    %c0_i32 = arith.constant 0 : i32
    %c0_i32_0 = arith.constant 0 : i32
    %c0_i32_1 = arith.constant 0 : i32
    return %c0_i32, %c0_i32_0 : i32, i32
  }
  func.func @transform_3(%arg0: i32) -> (i32, i32, i32) {
    %c0_i32 = arith.constant 0 : i32
    %c0_i32_0 = arith.constant 0 : i32
    %c0_i32_1 = arith.constant 0 : i32
    %c0_i32_2 = arith.constant 0 : i32
    return %c0_i32, %c0_i32_0, %c0_i32_1 : i32, i32, i32
  }
  func.func @transform_4(%arg0: i32) -> (i32, i32, i32) {
    %c0_i32 = arith.constant 0 : i32
    %c0_i32_0 = arith.constant 0 : i32
    %c0_i32_1 = arith.constant 0 : i32
    %c0_i32_2 = arith.constant 0 : i32
    return %c0_i32, %c0_i32_0, %c0_i32_1 : i32, i32, i32
  }
  func.func @transform_5(%arg0: i32) -> (i32, i32, i32) {
    %c0_i32 = arith.constant 0 : i32
    %c0_i32_0 = arith.constant 0 : i32
    %c0_i32_1 = arith.constant 0 : i32
    %c0_i32_2 = arith.constant 0 : i32
    return %c0_i32, %c0_i32_0, %c0_i32_1 : i32, i32, i32
  }
  func.func @transform_6(%arg0: i32) -> (i32, i32, i32) {
    %c0_i32 = arith.constant 0 : i32
    %c0_i32_0 = arith.constant 0 : i32
    %c0_i32_1 = arith.constant 0 : i32
    %c0_i32_2 = arith.constant 0 : i32
    return %c0_i32, %c0_i32_0, %c0_i32_1 : i32, i32, i32
  }
  func.func @transform_7(%arg0: i32) -> (i32, i32) {
    %c0_i32 = arith.constant 0 : i32
    %c0_i32_0 = arith.constant 0 : i32
    return %arg0, %c0_i32 : i32, i32
  }
}

</mosaic_0001>

<bundles_post_ra>
// kernel: tpu_custom_call.1
= control target key start
LH: loop header
LB: loop body
LE: loop exit
PB: predicated region body
PF: predicated region fallthrough
CT: control target
= control target key end

     0   :  { %12 = vsyncpa [#allocation3], 0  ;;  %s1276_s0 = inlined_call_operand.hbm [shape: bf16[16,128], index: 0, kind: input, shape index: {}]   ;;  %s1277_s1 = inlined_call_operand.hbm [shape: bf16[128,256], index: 1, kind: input, shape index: {}]   ;;  %s1278_s2 = inlined_call_operand.vmem [shape: f32[1,256], index: 2, kind: input, shape index: {}]   ;;  %s1279_s3 = inlined_call_operand.hbm [shape: bf16[2,128,128], index: 3, kind: input, shape index: {}]   ;;  %s1280_s4 = inlined_call_operand.vmem [shape: f32[2,1,128], index: 4, kind: input, shape index: {}]   ;;  %s1281_s5 = inlined_call_operand.hbm [shape: bf16[2,128,128], index: 5, kind: input, shape index: {}]   ;;  %s1282_s6 = inlined_call_operand.vmem [shape: f32[2,1,128], index: 6, kind: input, shape index: {}]   ;;  %s1283_s7 = inlined_call_operand.hbm [shape: f32[16,128], index: 7, kind: output, shape index: {}]  }
   0x1   :  { %13 = vsyncpa [#allocation6], 0 }
   0x2   :  { %14 = vsyncpa [#allocation9], 0 }
   0x3   :  { %15 = vsyncpa [#allocation4], 0  ;;  %s1087_s24 = smov [#allocation5]   ;;  %s969_s28 = scalar_lea.hbm %s1277_s1, 2048 }
   0x4   :  { %s33_s25 = sshll.u32 %s1087_s24, 4  ;;  %p970_p0 = scmp.ne.s32.totalorder %s1277_s1, %s969_s28  ;;  %s34_s25 = int_to_ptr.vmem [resolvable:$true] %s33_s25 }
   0x5   :  { %p973_p1 = scmp.lt.u32.totalorder %s969_s28, %s1277_s1 }
   0x7   :  { %p975_p2 = pnand %p973_p1, %p970_p0 }
   0x9   :  { %978 = shalt.err (!%p975_p2)
}
   0xa   :  { %s979_s10 = scalar_lea.vmem %s34_s25, 2048  ;;  %p984_p4 = scmp.lt.s32.totalorder %s34_s25, %s34_s25 }
   0xb   :  { %p980_p3 = scmp.ne.s32.totalorder %s34_s25, %s979_s10  ;;  %p985_p5 = scmp.lt.s32.totalorder %s979_s10, %s979_s10 }
   0xd   :  { %p986_p6 = por %p985_p5, %p984_p4 }
   0xf   :  { %p987_p7 = pnand %p986_p6, %p980_p3 }
  0x11   :  { %990 = shalt.err (!%p987_p7)
}
  0x12   :  { %s1088_s11 = smov 128   ;;  %s1089_s12 = smov 8  }
  0x13   :  { %39 = dma.hbm_to_vmem [thread:$0]  %s1277_s1, 2048, %s34_s25, [#allocation6], %s1088_s11, %s1088_s11, %s1089_s12  }
  0x14   :  { %s1090_s15 = smov [#allocation2]   ;;  %s991_s19 = scalar_lea.hbm %s1276_s0, 128 }
  0x15   :  { %s21_s16 = sshll.u32 %s1090_s15, 4  ;;  %p992_p8 = scmp.ne.s32.totalorder %s1276_s0, %s991_s19  ;;  %s22_s16 = int_to_ptr.vmem [resolvable:$true] %s21_s16 }
  0x16   :  { %p995_p9 = scmp.lt.u32.totalorder %s991_s19, %s1276_s0 }
  0x18   :  { %p997_p10 = pnand %p995_p9, %p992_p8 }
  0x1a   :  { %1000 = shalt.err (!%p997_p10)
}
  0x1b   :  { %s1001_s24 = scalar_lea.vmem %s22_s16, 128  ;;  %p1006_p12 = scmp.lt.s32.totalorder %s22_s16, %s22_s16 }
  0x1c   :  { %p1002_p11 = scmp.ne.s32.totalorder %s22_s16, %s1001_s24  ;;  %p1007_p13 = scmp.lt.s32.totalorder %s1001_s24, %s1001_s24 }
  0x1e   :  { %p1008_p0 = por %p1007_p13, %p1006_p12 }
  0x20   :  { %p1009_p1 = pnand %p1008_p0, %p1002_p11 }
  0x22   :  { %1012 = shalt.err (!%p1009_p1)
}
  0x23   :  { %s1091_s1 = smov 64   ;;  %s1092_s25 = smov 4  }
  0x24   :  { %27 = dma.hbm_to_vmem [thread:$0]  %s1276_s0, 128, %s22_s16, [#allocation3], %s1091_s1, %s1091_s1, %s1092_s25  }
  0x25   :  { %s1093_s28 = smov [#allocation7]   ;;  %s1094_s30 = smov [#allocation8]  }
  0x26   :  { %s47_s29 = sshll.u32 %s1093_s28, 4  ;;  %s61_s8 = sshll.u32 %s1094_s30, 4  ;;  %s48_s29 = int_to_ptr.vmem [resolvable:$true] %s47_s29  ;;  %s1169_s8 = int_to_ptr.vmem [resolvable:$true] %s61_s8 }
  0x27   :  { %s1013_s13 = scalar_lea.hbm %s1279_s3, 2048 }
  0x28   :  { %p1014_p2 = scmp.ne.s32.totalorder %s1279_s3, %s1013_s13  ;;  %p1017_p3 = scmp.lt.u32.totalorder %s1013_s13, %s1279_s3 }
  0x2a   :  { %p1019_p4 = pnand %p1017_p3, %p1014_p2 }
  0x2c   :  { %1022 = shalt.err (!%p1019_p4)
}
  0x2d   :  { %s1023_s0 = scalar_lea.vmem %s48_s29, 2048  ;;  %p1028_p6 = scmp.lt.s32.totalorder %s48_s29, %s48_s29 }
  0x2e   :  { %p1024_p5 = scmp.ne.s32.totalorder %s48_s29, %s1023_s0  ;;  %p1029_p7 = scmp.lt.s32.totalorder %s1023_s0, %s1023_s0 }
  0x30   :  { %p1030_p8 = por %p1029_p7, %p1028_p6 }
  0x32   :  { %p1031_p9 = pnand %p1030_p8, %p1024_p5 }
  0x34   :  { %1034 = shalt.err (!%p1031_p9)
}
  0x35   :  { %53 = dma.hbm_to_vmem [thread:$0]  %s1279_s3, 2048, %s48_s29, [#allocation6], %s1091_s1, %s1091_s1, %s1092_s25  }
  0x36   :  { %s1035_s22 = scalar_lea.hbm %s1281_s5, 2048 }
  0x37   :  { %p1036_p10 = scmp.ne.s32.totalorder %s1281_s5, %s1035_s22  ;;  %p1039_p11 = scmp.lt.u32.totalorder %s1035_s22, %s1281_s5 }
  0x39   :  { %p1041_p12 = pnand %p1039_p11, %p1036_p10 }
  0x3b   :  { %1044 = shalt.err (!%p1041_p12)
}
  0x3c   :  { %s1045_s28 = scalar_lea.vmem %s1169_s8, 2048  ;;  %p1050_p0 = scmp.lt.s32.totalorder %s1169_s8, %s1169_s8 }
  0x3d   :  { %p1046_p13 = scmp.ne.s32.totalorder %s1169_s8, %s1045_s28  ;;  %p1051_p1 = scmp.lt.s32.totalorder %s1045_s28, %s1045_s28 }
  0x3f   :  { %p1052_p2 = por %p1051_p1, %p1050_p0 }
  0x41   :  { %p1053_p3 = pnand %p1052_p2, %p1046_p13 }
  0x43   :  { %1056 = shalt.err (!%p1053_p3)
}
  0x44   :  { %67 = dma.hbm_to_vmem [thread:$0]  %s1281_s5, 2048, %s1169_s8, [#allocation9], %s1091_s1, %s1091_s1, %s1092_s25  }
  0x45   :  { %1079 = dma.done.wait [#allocation3], 128  }
  0x46   :  { %1080 = vsyncadd [#allocation3], 4294967168 }
  0x47   :  { %1081 = dma.done.wait [#allocation6], 4096  }
  0x48   :  { %1082 = vsyncadd [#allocation6], 4294963200 }
  0x49   :  { %1083 = dma.done.wait [#allocation9], 2048  }
  0x4a   :  { %1084 = vsyncadd [#allocation9], 4294965248  ;;  %v1095_v0 = vmov 0   ;;  %v1096_v1 = vmov 0.0   ;;  %v912_v2 = vld [vmem:[#allocation5 + $0x4] ss:$8 sps:$4 sm:$0xff]   ;;  %v103_v33 = vlaneseq }
  0x4b   :  { %231 = vmatprep.mubr.bf16.mxu0 %v1095_v0  ;;  %820 = vmatprep.subr.bf16.mxu1 %v1096_v1  ;;  %v914_v3 = vld [vmem:[#allocation5] ss:$8 sps:$4 sm:$0xff]   ;;  %v915_v4 = vld [vmem:[#allocation5 + $0x14] ss:$8 sps:$4 sm:$0xff]   ;;  %v917_v5 = vld [vmem:[#allocation5 + $0x10] ss:$8 sps:$4 sm:$0xff]  }
  0x4c   :  { %199 = vmatprep.subr.bf16.mxu0 %v912_v2  ;;  %v918_v6 = vld [vmem:[#allocation5 + $0x24] ss:$8 sps:$4 sm:$0xff]   ;;  %v920_v7 = vld [vmem:[#allocation5 + $0x20] ss:$8 sps:$4 sm:$0xff]   ;;  %v921_v8 = vld [vmem:[#allocation5 + $0x34] ss:$8 sps:$4 sm:$0xff]  }
  0x4d   :  { %200 = vmatpush1.bf16.msra.mxu0 %v914_v3  ;;  %v923_v9 = vld [vmem:[#allocation5 + $0x30] ss:$8 sps:$4 sm:$0xff]   ;;  %v924_v10 = vld [vmem:[#allocation5 + $0x44] ss:$8 sps:$4 sm:$0xff]   ;;  %v926_v13 = vld [vmem:[#allocation5 + $0x40] ss:$8 sps:$4 sm:$0xff]  }
  0x4e   :  { %201 = vmatprep.subr.bf16.mxu0 %v915_v4  ;;  %v937_v11 = vld [vmem:[#allocation7] sm:$0xff]   ;;  %v938_v12 = vld [vmem:[#allocation7 + $0x8] sm:$0xff]   ;;  %v927_v14 = vld [vmem:[#allocation5 + $0x54] ss:$8 sps:$4 sm:$0xff]   ;;  %vm1097_vm0 = vmmov 0   ;;  %v104_v34 = vshrl.u32 %v103_v33, 7 }
  0x4f   :  { %821 = vmatpush3.bf16.msra.mxu1 %v937_v11  ;;  %v929_v15 = vld [vmem:[#allocation5 + $0x50] ss:$8 sps:$4 sm:$0xff]   ;;  %v930_v17 = vld [vmem:[#allocation5 + $0x64] ss:$8 sps:$4 sm:$0xff]   ;;  %v932_v19 = vld [vmem:[#allocation5 + $0x60] ss:$8 sps:$4 sm:$0xff]   ;;  %836 = vmatprep.mubr.msk.bf16.mxu1 %vm1097_vm0, %v1096_v1 }
  0x50   :  { %822 = vmatprep.subr.bf16.mxu1 %v1096_v1  ;;  %v939_v16 = vld [vmem:[#allocation7 + $0x10] sm:$0xff]   ;;  %v940_v18 = vld [vmem:[#allocation7 + $0x18] sm:$0xff]   ;;  %v941_v21 = vld [vmem:[#allocation7 + $0x20] sm:$0xff]   ;;  %v105_v35 = vsub.s32 0, %v104_v34  ;;  %v109_v37 = vsub.s32 1, %v104_v34  ;;  %s1098_s14 = smov [#allocation10]  }
  0x51   :  { %202 = vmatpush1.bf16.msra.mxu0 %v917_v5  ;;  %v933_v20 = vld [vmem:[#allocation5 + $0x74] ss:$8 sps:$4 sm:$0xff]   ;;  %v935_v22 = vld [vmem:[#allocation5 + $0x70] ss:$8 sps:$4 sm:$0xff]   ;;  %v942_v24 = vld [vmem:[#allocation7 + $0x28] sm:$0xff]   ;;  %s715_s15 = sshll.u32 %s1098_s14, 4  ;;  %s716_s15 = int_to_ptr.vmem [resolvable:$true] %s715_s15 }
  0x52   :  { %203 = vmatprep.subr.bf16.mxu0 %v918_v6  ;;  %v936_v23 = vld [vmem:[#allocation2] sm:$0xff]   ;;  %v943_v25 = vld [vmem:[#allocation7 + $0x30] sm:$0xff]   ;;  %v953_v27 = vld [vmem:[#allocation8] sm:$0xff]   ;;  %s1057_s17 = scalar_lea.vmem %s716_s15, 256  ;;  %p1062_p5 = scmp.lt.s32.totalorder %s716_s15, %s716_s15 }
  0x53   :  { %823 = vmatpush3.bf16.msra.mxu1 %v938_v12  ;;  %v944_v26 = vld [vmem:[#allocation7 + $0x38] sm:$0xff]   ;;  %v954_v28 = vld [vmem:[#allocation8 + $0x8] sm:$0xff]   ;;  %v955_v29 = vld [vmem:[#allocation8 + $0x10] sm:$0xff]   ;;  %p1058_p4 = scmp.ne.s32.totalorder %s716_s15, %s1057_s17  ;;  %p1063_p6 = scmp.lt.s32.totalorder %s1057_s17, %s1057_s17 }
  0x54   :  { %824 = vmatprep.subr.bf16.mxu1 %v1096_v1  ;;  %v956_v30 = vld [vmem:[#allocation8 + $0x18] sm:$0xff]   ;;  %v957_v31 = vld [vmem:[#allocation8 + $0x20] sm:$0xff]   ;;  %v958_v32 = vld [vmem:[#allocation8 + $0x28] sm:$0xff]  }
  0x55   :  { %204 = vmatpush1.bf16.msra.mxu0 %v920_v7  ;;  %v101_v36 = vld [vmem:[%s1278_s2] sm:$0x3]  ;;  %v945_v52 = vld [vmem:[#allocation7 + $0x40] sm:$0xff]   ;;  %v946_v55 = vld [vmem:[#allocation7 + $0x48] sm:$0xff]   ;;  %p1064_p7 = por %p1063_p6, %p1062_p5 }
  0x56   :  { %205 = vmatprep.subr.bf16.mxu0 %v921_v8  ;;  %v106_v38 = vrot.slane %v101_v36, %v105_v35  ;;  %v110_v39 = vrot.slane %v101_v36, %v109_v37  ;;  %v947_v56 = vld [vmem:[#allocation7 + $0x50] sm:$0xff]   ;;  %v948_v57 = vld [vmem:[#allocation7 + $0x58] sm:$0xff]   ;;  %v949_v58 = vld [vmem:[#allocation7 + $0x60] sm:$0xff]  }
  0x57   :  { %825 = vmatpush3.bf16.msra.mxu1 %v939_v16  ;;  %v950_v59 = vld [vmem:[#allocation7 + $0x68] sm:$0xff]   ;;  %v951_v60 = vld [vmem:[#allocation7 + $0x70] sm:$0xff]   ;;  %v952_v61 = vld [vmem:[#allocation7 + $0x78] sm:$0xff]   ;;  %p1065_p8 = pnand %p1064_p7, %p1058_p4 }
  0x58   :  { %826 = vmatprep.subr.bf16.mxu1 %v1096_v1  ;;  %v959_v62 = vld [vmem:[#allocation8 + $0x30] sm:$0xff]   ;;  %v960_v63 = vld [vmem:[#allocation8 + $0x38] sm:$0xff]   ;;  %v962_v12 = vld [vmem:[#allocation8 + $0x48] sm:$0xff]  }
  0x59   :  { %206 = vmatpush1.bf16.msra.mxu0 %v923_v9  ;;  %v746_v0 = vld [vmem:[%s1280_s4] ss:$0 sm:$0xff]  ;;  %v966_v16 = vld [vmem:[#allocation8 + $0x68] sm:$0xff]   ;;  %v775_v34 = vld [vmem:[%s1282_s6 + $0x1] ss:$0 sm:$0xff] }
  0x5a   :  { %207 = vmatprep.subr.bf16.mxu0 %v924_v10  ;;  %v961_v10 = vld [vmem:[#allocation8 + $0x40] sm:$0xff]   ;;  %v755_v33 = vld [vmem:[%s1282_s6] ss:$0 sm:$0xff] }
  0x5b   :  { %827 = vmatpush3.bf16.msra.mxu1 %v940_v18  ;;  %v967_v18 = vld [vmem:[#allocation8 + $0x70] sm:$0xff]  }
  0x5c   :  { %828 = vmatprep.subr.bf16.mxu1 %v1096_v1 }
  0x5d   :  { %208 = vmatpush1.bf16.msra.mxu0 %v926_v13  ;;  %v963_v13 = vld [vmem:[#allocation8 + $0x50] sm:$0xff]  }
  0x5e   :  { %209 = vmatprep.subr.bf16.mxu0 %v927_v14  ;;  %v964_v14 = vld [vmem:[#allocation8 + $0x58] sm:$0xff]  }
  0x5f   :  { %829 = vmatpush3.bf16.msra.mxu1 %v941_v21 }
  0x60   :  { %830 = vmatprep.subr.bf16.mxu1 %v1096_v1 }
  0x61   :  { %210 = vmatpush1.bf16.msra.mxu0 %v929_v15  ;;  %v965_v15 = vld [vmem:[#allocation8 + $0x60] sm:$0xff]  }
  0x62   :  { %211 = vmatprep.subr.bf16.mxu0 %v930_v17  ;;  %v765_v17 = vld [vmem:[%s1280_s4 + $0x1] ss:$0 sm:$0xff] }
  0x63   :  { %831 = vmatpush3.bf16.msra.mxu1 %v942_v24 }
  0x64   :  { %832 = vmatprep.subr.bf16.mxu1 %v1096_v1 }
  0x65   :  { %212 = vmatpush1.bf16.msra.mxu0 %v932_v19 }
  0x66   :  { %213 = vmatprep.subr.bf16.mxu0 %v933_v20 }
  0x67   :  { %833 = vmatpush3.bf16.msra.mxu1 %v943_v25 }
  0x68   :  { %834 = vmatprep.subr.bf16.mxu1 %v1096_v1 }
  0x69   :  { %214 = vmatpush1.bf16.msra.mxu0 %v935_v22 }
  0x6a   :  { %840 = vmatprep.subr.bf16.mxu0 %v1096_v1 }
  0x6b   :  { %835 = vmatpush3.bf16.msra.mxu1 %v944_v26 }
  0x6c   :  { %232 = vmatmul.mubr.bf16.vlgmr.msra.gmra.mrb[0].mxu0 %v936_v23  ;;  %860 = vmatprep.subr.bf16.mxu1 %v1096_v1  ;;  %v968_v23 = vld [vmem:[#allocation8 + $0x78] sm:$0xff]  }
  0x6d   :  { %856 = vmatprep.mubr.msk.bf16.mxu0 %vm1097_vm0, %v1096_v1  ;;  %841 = vmatpush3.bf16.msra.mxu0 %v953_v27 }
  0x6e   :  { %842 = vmatprep.subr.bf16.mxu0 %v1096_v1 }
  0x71   :  { %843 = vmatpush3.bf16.msra.mxu0 %v954_v28 }
  0x72   :  { %844 = vmatprep.subr.bf16.mxu0 %v1096_v1 }
  0x75   :  { %845 = vmatpush3.bf16.msra.mxu0 %v955_v29 }
  0x76   :  { %846 = vmatprep.subr.bf16.mxu0 %v1096_v1 }
  0x79   :  { %847 = vmatpush3.bf16.msra.mxu0 %v956_v30 }
  0x7a   :  { %848 = vmatprep.subr.bf16.mxu0 %v1096_v1 }
  0x7d   :  { %849 = vmatpush3.bf16.msra.mxu0 %v957_v31 }
  0x7e   :  { %850 = vmatprep.subr.bf16.mxu0 %v1096_v1 }
  0x81   :  { %851 = vmatpush3.bf16.msra.mxu0 %v958_v32 }
  0x82   :  { %852 = vmatprep.subr.bf16.mxu0 %v1096_v1 }
  0x85   :  { %853 = vmatpush3.bf16.msra.mxu0 %v959_v62 }
  0x86   :  { %854 = vmatprep.subr.bf16.mxu0 %v1096_v1 }
  0x89   :  { %855 = vmatpush3.bf16.msra.mxu0 %v960_v63 }
  0x8a   :  { %880 = vmatprep.subr.bf16.mxu0 %v1096_v1 }
 0x13f   :  { %v233_v40 = vpop.f32.mrb[0].mxu0 }
 0x140   :  { %v234_v41 = vadd.f32 %v233_v40, %v106_v38  ;;  %v235_v42 = vpop.f32.mrb[1].mxu0 }
 0x141   :  { %v236_v43 = vadd.f32 %v235_v42, %v110_v39  ;;  %v237_v44 = vpop.f32.mrb[2].mxu0 }
 0x142   :  { %v238_v45 = vadd.f32 %v237_v44, %v106_v38  ;;  %v239_v46 = vpop.f32.mrb[3].mxu0  ;;  %v242_v48 = vmax.f32 %v234_v41, 0.0 }
 0x143   :  { %v240_v47 = vadd.f32 %v239_v46, %v110_v39  ;;  %v243_v50 = vmax.f32 %v236_v43, 0.0 }
 0x144   :  { %v244_v49 = vmax.f32 %v238_v45, 0.0 }
 0x145   :  { %v245_v51 = vmax.f32 %v240_v47, 0.0 }
 0x146   :  { %v246_v53 = vpack.c.bf16 %v244_v49, %v242_v48 }
 0x147   :  { %v474_v54 = vpack.c.bf16 %v245_v51, %v243_v50 }
 0x148   :  { %837 = vmatmul.mubr.bf16.vlgmr.msra.gmra.mrb[0].mxu1 %v246_v53 }
 0x149   :  { %861 = vmatpush3.bf16.msra.mxu1 %v945_v52  ;;  %876 = vmatprep.mubr.msk.bf16.mxu1 %vm1097_vm0, %v1096_v1 }
 0x14a   :  { %862 = vmatprep.subr.bf16.mxu1 %v1096_v1 }
 0x14d   :  { %863 = vmatpush3.bf16.msra.mxu1 %v946_v55 }
 0x14e   :  { %864 = vmatprep.subr.bf16.mxu1 %v1096_v1 }
 0x151   :  { %865 = vmatpush3.bf16.msra.mxu1 %v947_v56 }
 0x152   :  { %866 = vmatprep.subr.bf16.mxu1 %v1096_v1 }
 0x155   :  { %867 = vmatpush3.bf16.msra.mxu1 %v948_v57 }
 0x156   :  { %868 = vmatprep.subr.bf16.mxu1 %v1096_v1 }
 0x159   :  { %869 = vmatpush3.bf16.msra.mxu1 %v949_v58 }
 0x15a   :  { %870 = vmatprep.subr.bf16.mxu1 %v1096_v1 }
 0x15d   :  { %871 = vmatpush3.bf16.msra.mxu1 %v950_v59 }
 0x15e   :  { %872 = vmatprep.subr.bf16.mxu1 %v1096_v1 }
 0x161   :  { %873 = vmatpush3.bf16.msra.mxu1 %v951_v60 }
 0x162   :  { %874 = vmatprep.subr.bf16.mxu1 %v1096_v1 }
 0x165   :  { %875 = vmatpush3.bf16.msra.mxu1 %v952_v61 }
 0x168   :  { %877 = vmatmul.mubr.bf16.vlgmr.msra.gmra.mrb[4].mxu1 %v474_v54 }
 0x21b   :  { %v352_v2 = vpop.f32.mrb[0].mxu1 }
 0x21c   :  { %v353_v3 = vadd.f32 %v746_v0, %v352_v2  ;;  %v838_v4 = vpop.f32.mrb[1].mxu1 }
 0x21d   :  { %v355_v5 = vpop.f32.mrb[2].mxu1 }
 0x21e   :  { %v356_v6 = vadd.f32 %v746_v0, %v355_v5  ;;  %v839_v7 = vpop.f32.mrb[3].mxu1  ;;  %v359_v8 = vmax.f32 %v353_v3, 0.0 }
 0x220   :  { %v360_v9 = vmax.f32 %v356_v6, 0.0 }
 0x222   :  { %v361_v11 = vpack.c.bf16 %v360_v9, %v359_v8 }
 0x224   :  { %857 = vmatmul.mubr.bf16.vlgmr.msra.gmra.mrb[4].mxu0 %v361_v11 }
 0x225   :  { %881 = vmatpush3.bf16.msra.mxu0 %v961_v10  ;;  %896 = vmatprep.mubr.msk.bf16.mxu0 %vm1097_vm0, %v1096_v1 }
 0x226   :  { %882 = vmatprep.subr.bf16.mxu0 %v1096_v1 }
 0x229   :  { %883 = vmatpush3.bf16.msra.mxu0 %v962_v12 }
 0x22a   :  { %884 = vmatprep.subr.bf16.mxu0 %v1096_v1 }
 0x22d   :  { %885 = vmatpush3.bf16.msra.mxu0 %v963_v13 }
 0x22e   :  { %886 = vmatprep.subr.bf16.mxu0 %v1096_v1 }
 0x231   :  { %887 = vmatpush3.bf16.msra.mxu0 %v964_v14 }
 0x232   :  { %888 = vmatprep.subr.bf16.mxu0 %v1096_v1 }
 0x235   :  { %889 = vmatpush3.bf16.msra.mxu0 %v965_v15 }
 0x236   :  { %890 = vmatprep.subr.bf16.mxu0 %v1096_v1 }
 0x239   :  { %891 = vmatpush3.bf16.msra.mxu0 %v966_v16 }
 0x23a   :  { %892 = vmatprep.subr.bf16.mxu0 %v1096_v1 }
 0x23b   :  { %v582_v19 = vpop.f32.mrb[4].mxu1 }
 0x23c   :  { %v583_v20 = vadd.f32 %v765_v17, %v582_v19  ;;  %v878_v21 = vpop.f32.mrb[5].mxu1 }
 0x23d   :  { %v585_v22 = vpop.f32.mrb[6].mxu1  ;;  %893 = vmatpush3.bf16.msra.mxu0 %v967_v18 }
 0x23e   :  { %v586_v24 = vadd.f32 %v765_v17, %v585_v22  ;;  %v879_v25 = vpop.f32.mrb[7].mxu1  ;;  %894 = vmatprep.subr.bf16.mxu0 %v1096_v1  ;;  %v589_v26 = vmax.f32 %v583_v20, 0.0 }
 0x240   :  { %v590_v27 = vmax.f32 %v586_v24, 0.0 }
 0x241   :  { %895 = vmatpush3.bf16.msra.mxu0 %v968_v23 }
 0x242   :  { %v591_v28 = vpack.c.bf16 %v590_v27, %v589_v26 }
 0x244   :  { %897 = vmatmul.mubr.bf16.vlgmr.msra.gmra.mrb[8].mxu0 %v591_v28 }
 0x2f7   :  { %v467_v29 = vpop.f32.mrb[4].mxu0 }
 0x2f8   :  { %v858_v30 = vpop.f32.mrb[5].mxu0  ;;  %v468_v36 = vadd.f32 %v755_v33, %v467_v29 }
 0x2f9   :  { %v470_v31 = vpop.f32.mrb[6].mxu0 }
 0x2fa   :  { %v859_v32 = vpop.f32.mrb[7].mxu0  ;;  %v471_v39 = vadd.f32 %v755_v33, %v470_v31 }
 0x317   :  { %v699_v35 = vpop.f32.mrb[8].mxu0 }
 0x318   :  { %v700_v1 = vadd.f32 %v775_v34, %v699_v35  ;;  %v898_v37 = vpop.f32.mrb[9].mxu0 }
 0x319   :  { %v702_v38 = vpop.f32.mrb[10].mxu0 }
 0x31a   :  { %v706_v40 = vmin.f32 %v468_v36, %v700_v1  ;;  %v703_v41 = vadd.f32 %v775_v34, %v702_v38  ;;  %v899_v42 = vpop.f32.mrb[11].mxu0 }
 0x31c   :  { %708 = vst [vmem:[#allocation10] sm:$0xff] %v706_v40  ;;  %v707_v43 = vmin.f32 %v471_v39, %v703_v41 }
 0x31e   :  { %709 = vst [vmem:[#allocation10 + $0x8] sm:$0xff] %v707_v43 }
 0x31f   :  { %1068 = shalt.err (!%p1065_p8)
}
 0x320   :  { %s1069_s0 = scalar_lea.hbm %s1283_s7, 256 }
 0x321   :  { %p1070_p9 = scmp.ne.s32.totalorder %s1283_s7, %s1069_s0  ;;  %p1073_p10 = scmp.lt.u32.totalorder %s1069_s0, %s1283_s7 }
 0x323   :  { %p1075_p11 = pnand %p1073_p10, %p1070_p9 }
 0x325   :  { %1078 = shalt.err (!%p1075_p11)
}
 0x326   :  { %721 = dma.vmem_to_hbm [thread:$0]  %s716_s15, 256, %s1283_s7, [#allocation4], %s1088_s11, %s1088_s11, %s1089_s12  }
 0x327   :  { %1085 = dma.done.wait [#allocation4], 256  }
 0x328   :  { %1086 = vsyncadd [#allocation4], 4294967040 }
 0x329   :  { %725 = vsyncpa [#allocation3], 1 }
 0x32a   :  { %726 = vsyncpa [#allocation6], 1 }
 0x32b   :  { %727 = vsyncpa [#allocation9], 1 }
 0x32c   :  { %728 = vsyncpa [#allocation4], 1 }

// kernel: tpu_custom_call.1
= control target key start
LH: loop header
LB: loop body
LE: loop exit
PB: predicated region body
PF: predicated region fallthrough
CT: control target
= control target key end

     0   :  { %12 = vsyncpa [#allocation3], 0  ;;  %s1276_s0 = inlined_call_operand.hbm [shape: bf16[16,128], index: 0, kind: input, shape index: {}]   ;;  %s1277_s1 = inlined_call_operand.hbm [shape: bf16[128,256], index: 1, kind: input, shape index: {}]   ;;  %s1278_s2 = inlined_call_operand.vmem [shape: f32[1,256], index: 2, kind: input, shape index: {}]   ;;  %s1279_s3 = inlined_call_operand.hbm [shape: bf16[2,128,128], index: 3, kind: input, shape index: {}]   ;;  %s1280_s4 = inlined_call_operand.vmem [shape: f32[2,1,128], index: 4, kind: input, shape index: {}]   ;;  %s1281_s5 = inlined_call_operand.hbm [shape: bf16[2,128,128], index: 5, kind: input, shape index: {}]   ;;  %s1282_s6 = inlined_call_operand.vmem [shape: f32[2,1,128], index: 6, kind: input, shape index: {}]   ;;  %s1283_s7 = inlined_call_operand.hbm [shape: f32[16,128], index: 7, kind: output, shape index: {}]  }
   0x1   :  { %13 = vsyncpa [#allocation6], 0 }
   0x2   :  { %14 = vsyncpa [#allocation9], 0 }
   0x3   :  { %15 = vsyncpa [#allocation4], 0  ;;  %s1087_s24 = smov [#allocation5]   ;;  %s969_s28 = scalar_lea.hbm %s1277_s1, 2048 }
   0x4   :  { %s33_s25 = sshll.u32 %s1087_s24, 4  ;;  %p970_p0 = scmp.ne.s32.totalorder %s1277_s1, %s969_s28  ;;  %s34_s25 = int_to_ptr.vmem [resolvable:$true] %s33_s25 }
   0x5   :  { %p973_p1 = scmp.lt.u32.totalorder %s969_s28, %s1277_s1 }
   0x7   :  { %p975_p2 = pnand %p973_p1, %p970_p0 }
   0x9   :  { %978 = shalt.err (!%p975_p2)
}
   0xa   :  { %s979_s10 = scalar_lea.vmem %s34_s25, 2048  ;;  %p984_p4 = scmp.lt.s32.totalorder %s34_s25, %s34_s25 }
   0xb   :  { %p980_p3 = scmp.ne.s32.totalorder %s34_s25, %s979_s10  ;;  %p985_p5 = scmp.lt.s32.totalorder %s979_s10, %s979_s10 }
   0xd   :  { %p986_p6 = por %p985_p5, %p984_p4 }
   0xf   :  { %p987_p7 = pnand %p986_p6, %p980_p3 }
  0x11   :  { %990 = shalt.err (!%p987_p7)
}
  0x12   :  { %s1088_s11 = smov 128   ;;  %s1089_s12 = smov 8  }
  0x13   :  { %39 = dma.hbm_to_vmem [thread:$0]  %s1277_s1, 2048, %s34_s25, [#allocation6], %s1088_s11, %s1088_s11, %s1089_s12  }
  0x14   :  { %s1090_s15 = smov [#allocation2]   ;;  %s991_s19 = scalar_lea.hbm %s1276_s0, 128 }
  0x15   :  { %s21_s16 = sshll.u32 %s1090_s15, 4  ;;  %p992_p8 = scmp.ne.s32.totalorder %s1276_s0, %s991_s19  ;;  %s22_s16 = int_to_ptr.vmem [resolvable:$true] %s21_s16 }
  0x16   :  { %p995_p9 = scmp.lt.u32.totalorder %s991_s19, %s1276_s0 }
  0x18   :  { %p997_p10 = pnand %p995_p9, %p992_p8 }
  0x1a   :  { %1000 = shalt.err (!%p997_p10)
}
  0x1b   :  { %s1001_s24 = scalar_lea.vmem %s22_s16, 128  ;;  %p1006_p12 = scmp.lt.s32.totalorder %s22_s16, %s22_s16 }
  0x1c   :  { %p1002_p11 = scmp.ne.s32.totalorder %s22_s16, %s1001_s24  ;;  %p1007_p13 = scmp.lt.s32.totalorder %s1001_s24, %s1001_s24 }
  0x1e   :  { %p1008_p0 = por %p1007_p13, %p1006_p12 }
  0x20   :  { %p1009_p1 = pnand %p1008_p0, %p1002_p11 }
  0x22   :  { %1012 = shalt.err (!%p1009_p1)
}
  0x23   :  { %s1091_s1 = smov 64   ;;  %s1092_s25 = smov 4  }
  0x24   :  { %27 = dma.hbm_to_vmem [thread:$0]  %s1276_s0, 128, %s22_s16, [#allocation3], %s1091_s1, %s1091_s1, %s1092_s25  }
  0x25   :  { %s1093_s28 = smov [#allocation7]   ;;  %s1094_s30 = smov [#allocation8]  }
  0x26   :  { %s47_s29 = sshll.u32 %s1093_s28, 4  ;;  %s61_s8 = sshll.u32 %s1094_s30, 4  ;;  %s48_s29 = int_to_ptr.vmem [resolvable:$true] %s47_s29  ;;  %s1169_s8 = int_to_ptr.vmem [resolvable:$true] %s61_s8 }
  0x27   :  { %s1013_s13 = scalar_lea.hbm %s1279_s3, 2048 }
  0x28   :  { %p1014_p2 = scmp.ne.s32.totalorder %s1279_s3, %s1013_s13  ;;  %p1017_p3 = scmp.lt.u32.totalorder %s1013_s13, %s1279_s3 }
  0x2a   :  { %p1019_p4 = pnand %p1017_p3, %p1014_p2 }
  0x2c   :  { %1022 = shalt.err (!%p1019_p4)
}
  0x2d   :  { %s1023_s0 = scalar_lea.vmem %s48_s29, 2048  ;;  %p1028_p6 = scmp.lt.s32.totalorder %s48_s29, %s48_s29 }
  0x2e   :  { %p1024_p5 = scmp.ne.s32.totalorder %s48_s29, %s1023_s0  ;;  %p1029_p7 = scmp.lt.s32.totalorder %s1023_s0, %s1023_s0 }
  0x30   :  { %p1030_p8 = por %p1029_p7, %p1028_p6 }
  0x32   :  { %p1031_p9 = pnand %p1030_p8, %p1024_p5 }
  0x34   :  { %1034 = shalt.err (!%p1031_p9)
}
  0x35   :  { %53 = dma.hbm_to_vmem [thread:$0]  %s1279_s3, 2048, %s48_s29, [#allocation6], %s1091_s1, %s1091_s1, %s1092_s25  }
  0x36   :  { %s1035_s22 = scalar_lea.hbm %s1281_s5, 2048 }
  0x37   :  { %p1036_p10 = scmp.ne.s32.totalorder %s1281_s5, %s1035_s22  ;;  %p1039_p11 = scmp.lt.u32.totalorder %s1035_s22, %s1281_s5 }
  0x39   :  { %p1041_p12 = pnand %p1039_p11, %p1036_p10 }
  0x3b   :  { %1044 = shalt.err (!%p1041_p12)
}
  0x3c   :  { %s1045_s28 = scalar_lea.vmem %s1169_s8, 2048  ;;  %p1050_p0 = scmp.lt.s32.totalorder %s1169_s8, %s1169_s8 }
  0x3d   :  { %p1046_p13 = scmp.ne.s32.totalorder %s1169_s8, %s1045_s28  ;;  %p1051_p1 = scmp.lt.s32.totalorder %s1045_s28, %s1045_s28 }
  0x3f   :  { %p1052_p2 = por %p1051_p1, %p1050_p0 }
  0x41   :  { %p1053_p3 = pnand %p1052_p2, %p1046_p13 }
  0x43   :  { %1056 = shalt.err (!%p1053_p3)
}
  0x44   :  { %67 = dma.hbm_to_vmem [thread:$0]  %s1281_s5, 2048, %s1169_s8, [#allocation9], %s1091_s1, %s1091_s1, %s1092_s25  }
  0x45   :  { %1079 = dma.done.wait [#allocation3], 128  }
  0x46   :  { %1080 = vsyncadd [#allocation3], 4294967168 }
  0x47   :  { %1081 = dma.done.wait [#allocation6], 4096  }
  0x48   :  { %1082 = vsyncadd [#allocation6], 4294963200 }
  0x49   :  { %1083 = dma.done.wait [#allocation9], 2048  }
  0x4a   :  { %1084 = vsyncadd [#allocation9], 4294965248  ;;  %v1095_v0 = vmov 0   ;;  %v1096_v1 = vmov 0.0   ;;  %v912_v2 = vld [vmem:[#allocation5 + $0x4] ss:$8 sps:$4 sm:$0xff]   ;;  %v103_v33 = vlaneseq }
  0x4b   :  { %231 = vmatprep.mubr.bf16.mxu0 %v1095_v0  ;;  %820 = vmatprep.subr.bf16.mxu1 %v1096_v1  ;;  %v914_v3 = vld [vmem:[#allocation5] ss:$8 sps:$4 sm:$0xff]   ;;  %v915_v4 = vld [vmem:[#allocation5 + $0x14] ss:$8 sps:$4 sm:$0xff]   ;;  %v917_v5 = vld [vmem:[#allocation5 + $0x10] ss:$8 sps:$4 sm:$0xff]  }
  0x4c   :  { %199 = vmatprep.subr.bf16.mxu0 %v912_v2  ;;  %v918_v6 = vld [vmem:[#allocation5 + $0x24] ss:$8 sps:$4 sm:$0xff]   ;;  %v920_v7 = vld [vmem:[#allocation5 + $0x20] ss:$8 sps:$4 sm:$0xff]   ;;  %v921_v8 = vld [vmem:[#allocation5 + $0x34] ss:$8 sps:$4 sm:$0xff]  }
  0x4d   :  { %200 = vmatpush1.bf16.msra.mxu0 %v914_v3  ;;  %v923_v9 = vld [vmem:[#allocation5 + $0x30] ss:$8 sps:$4 sm:$0xff]   ;;  %v924_v10 = vld [vmem:[#allocation5 + $0x44] ss:$8 sps:$4 sm:$0xff]   ;;  %v926_v13 = vld [vmem:[#allocation5 + $0x40] ss:$8 sps:$4 sm:$0xff]  }
  0x4e   :  { %201 = vmatprep.subr.bf16.mxu0 %v915_v4  ;;  %v937_v11 = vld [vmem:[#allocation7] sm:$0xff]   ;;  %v938_v12 = vld [vmem:[#allocation7 + $0x8] sm:$0xff]   ;;  %v927_v14 = vld [vmem:[#allocation5 + $0x54] ss:$8 sps:$4 sm:$0xff]   ;;  %vm1097_vm0 = vmmov 0   ;;  %v104_v34 = vshrl.u32 %v103_v33, 7 }
  0x4f   :  { %821 = vmatpush3.bf16.msra.mxu1 %v937_v11  ;;  %v929_v15 = vld [vmem:[#allocation5 + $0x50] ss:$8 sps:$4 sm:$0xff]   ;;  %v930_v17 = vld [vmem:[#allocation5 + $0x64] ss:$8 sps:$4 sm:$0xff]   ;;  %v932_v19 = vld [vmem:[#allocation5 + $0x60] ss:$8 sps:$4 sm:$0xff]   ;;  %836 = vmatprep.mubr.msk.bf16.mxu1 %vm1097_vm0, %v1096_v1 }
  0x50   :  { %822 = vmatprep.subr.bf16.mxu1 %v1096_v1  ;;  %v939_v16 = vld [vmem:[#allocation7 + $0x10] sm:$0xff]   ;;  %v940_v18 = vld [vmem:[#allocation7 + $0x18] sm:$0xff]   ;;  %v941_v21 = vld [vmem:[#allocation7 + $0x20] sm:$0xff]   ;;  %v105_v35 = vsub.s32 0, %v104_v34  ;;  %v109_v37 = vsub.s32 1, %v104_v34  ;;  %s1098_s14 = smov [#allocation10]  }
  0x51   :  { %202 = vmatpush1.bf16.msra.mxu0 %v917_v5  ;;  %v933_v20 = vld [vmem:[#allocation5 + $0x74] ss:$8 sps:$4 sm:$0xff]   ;;  %v935_v22 = vld [vmem:[#allocation5 + $0x70] ss:$8 sps:$4 sm:$0xff]   ;;  %v942_v24 = vld [vmem:[#allocation7 + $0x28] sm:$0xff]   ;;  %s715_s15 = sshll.u32 %s1098_s14, 4  ;;  %s716_s15 = int_to_ptr.vmem [resolvable:$true] %s715_s15 }
  0x52   :  { %203 = vmatprep.subr.bf16.mxu0 %v918_v6  ;;  %v936_v23 = vld [vmem:[#allocation2] sm:$0xff]   ;;  %v943_v25 = vld [vmem:[#allocation7 + $0x30] sm:$0xff]   ;;  %v953_v27 = vld [vmem:[#allocation8] sm:$0xff]   ;;  %s1057_s17 = scalar_lea.vmem %s716_s15, 256  ;;  %p1062_p5 = scmp.lt.s32.totalorder %s716_s15, %s716_s15 }
  0x53   :  { %823 = vmatpush3.bf16.msra.mxu1 %v938_v12  ;;  %v944_v26 = vld [vmem:[#allocation7 + $0x38] sm:$0xff]   ;;  %v954_v28 = vld [vmem:[#allocation8 + $0x8] sm:$0xff]   ;;  %v955_v29 = vld [vmem:[#allocation8 + $0x10] sm:$0xff]   ;;  %p1058_p4 = scmp.ne.s32.totalorder %s716_s15, %s1057_s17  ;;  %p1063_p6 = scmp.lt.s32.totalorder %s1057_s17, %s1057_s17 }
  0x54   :  { %824 = vmatprep.subr.bf16.mxu1 %v1096_v1  ;;  %v956_v30 = vld [vmem:[#allocation8 + $0x18] sm:$0xff]   ;;  %v957_v31 = vld [vmem:[#allocation8 + $0x20] sm:$0xff]   ;;  %v958_v32 = vld [vmem:[#allocation8 + $0x28] sm:$0xff]  }
  0x55   :  { %204 = vmatpush1.bf16.msra.mxu0 %v920_v7  ;;  %v101_v36 = vld [vmem:[%s1278_s2] sm:$0x3]  ;;  %v945_v52 = vld [vmem:[#allocation7 + $0x40] sm:$0xff]   ;;  %v946_v55 = vld [vmem:[#allocation7 + $0x48] sm:$0xff]   ;;  %p1064_p7 = por %p1063_p6, %p1062_p5 }
  0x56   :  { %205 = vmatprep.subr.bf16.mxu0 %v921_v8  ;;  %v106_v38 = vrot.slane %v101_v36, %v105_v35  ;;  %v110_v39 = vrot.slane %v101_v36, %v109_v37  ;;  %v947_v56 = vld [vmem:[#allocation7 + $0x50] sm:$0xff]   ;;  %v948_v57 = vld [vmem:[#allocation7 + $0x58] sm:$0xff]   ;;  %v949_v58 = vld [vmem:[#allocation7 + $0x60] sm:$0xff]  }
  0x57   :  { %825 = vmatpush3.bf16.msra.mxu1 %v939_v16  ;;  %v950_v59 = vld [vmem:[#allocation7 + $0x68] sm:$0xff]   ;;  %v951_v60 = vld [vmem:[#allocation7 + $0x70] sm:$0xff]   ;;  %v952_v61 = vld [vmem:[#allocation7 + $0x78] sm:$0xff]   ;;  %p1065_p8 = pnand %p1064_p7, %p1058_p4 }
  0x58   :  { %826 = vmatprep.subr.bf16.mxu1 %v1096_v1  ;;  %v959_v62 = vld [vmem:[#allocation8 + $0x30] sm:$0xff]   ;;  %v960_v63 = vld [vmem:[#allocation8 + $0x38] sm:$0xff]   ;;  %v962_v12 = vld [vmem:[#allocation8 + $0x48] sm:$0xff]  }
  0x59   :  { %206 = vmatpush1.bf16.msra.mxu0 %v923_v9  ;;  %v746_v0 = vld [vmem:[%s1280_s4] ss:$0 sm:$0xff]  ;;  %v966_v16 = vld [vmem:[#allocation8 + $0x68] sm:$0xff]   ;;  %v775_v34 = vld [vmem:[%s1282_s6 + $0x1] ss:$0 sm:$0xff] }
  0x5a   :  { %207 = vmatprep.subr.bf16.mxu0 %v924_v10  ;;  %v961_v10 = vld [vmem:[#allocation8 + $0x40] sm:$0xff]   ;;  %v755_v33 = vld [vmem:[%s1282_s6] ss:$0 sm:$0xff] }
  0x5b   :  { %827 = vmatpush3.bf16.msra.mxu1 %v940_v18  ;;  %v967_v18 = vld [vmem:[#allocation8 + $0x70] sm:$0xff]  }
  0x5c   :  { %828 = vmatprep.subr.bf16.mxu1 %v1096_v1 }
  0x5d   :  { %208 = vmatpush1.bf16.msra.mxu0 %v926_v13  ;;  %v963_v13 = vld [vmem:[#allocation8 + $0x50] sm:$0xff]  }
  0x5e   :  { %209 = vmatprep.subr.bf16.mxu0 %v927_v14  ;;  %v964_v14 = vld [vmem:[#allocation8 + $0x58] sm:$0xff]  }
  0x5f   :  { %829 = vmatpush3.bf16.msra.mxu1 %v941_v21 }
  0x60   :  { %830 = vmatprep.subr.bf16.mxu1 %v1096_v1 }
  0x61   :  { %210 = vmatpush1.bf16.msra.mxu0 %v929_v15  ;;  %v965_v15 = vld [vmem:[#allocation8 + $0x60] sm:$0xff]  }
  0x62   :  { %211 = vmatprep.subr.bf16.mxu0 %v930_v17  ;;  %v765_v17 = vld [vmem:[%s1280_s4 + $0x1] ss:$0 sm:$0xff] }
  0x63   :  { %831 = vmatpush3.bf16.msra.mxu1 %v942_v24 }
  0x64   :  { %832 = vmatprep.subr.bf16.mxu1 %v1096_v1 }
  0x65   :  { %212 = vmatpush1.bf16.msra.mxu0 %v932_v19 }
  0x66   :  { %213 = vmatprep.subr.bf16.mxu0 %v933_v20 }
  0x67   :  { %833 = vmatpush3.bf16.msra.mxu1 %v943_v25 }
  0x68   :  { %834 = vmatprep.subr.bf16.mxu1 %v1096_v1 }
  0x69   :  { %214 = vmatpush1.bf16.msra.mxu0 %v935_v22 }
  0x6a   :  { %840 = vmatprep.subr.bf16.mxu0 %v1096_v1 }
  0x6b   :  { %835 = vmatpush3.bf16.msra.mxu1 %v944_v26 }
  0x6c   :  { %232 = vmatmul.mubr.bf16.vlgmr.msra.gmra.mrb[0].mxu0 %v936_v23  ;;  %860 = vmatprep.subr.bf16.mxu1 %v1096_v1  ;;  %v968_v23 = vld [vmem:[#allocation8 + $0x78] sm:$0xff]  }
  0x6d   :  { %856 = vmatprep.mubr.msk.bf16.mxu0 %vm1097_vm0, %v1096_v1  ;;  %841 = vmatpush3.bf16.msra.mxu0 %v953_v27 }
  0x6e   :  { %842 = vmatprep.subr.bf16.mxu0 %v1096_v1 }
  0x71   :  { %843 = vmatpush3.bf16.msra.mxu0 %v954_v28 }
  0x72   :  { %844 = vmatprep.subr.bf16.mxu0 %v1096_v1 }
  0x75   :  { %845 = vmatpush3.bf16.msra.mxu0 %v955_v29 }
  0x76   :  { %846 = vmatprep.subr.bf16.mxu0 %v1096_v1 }
  0x79   :  { %847 = vmatpush3.bf16.msra.mxu0 %v956_v30 }
  0x7a   :  { %848 = vmatprep.subr.bf16.mxu0 %v1096_v1 }
  0x7d   :  { %849 = vmatpush3.bf16.msra.mxu0 %v957_v31 }
  0x7e   :  { %850 = vmatprep.subr.bf16.mxu0 %v1096_v1 }
  0x81   :  { %851 = vmatpush3.bf16.msra.mxu0 %v958_v32 }
  0x82   :  { %852 = vmatprep.subr.bf16.mxu0 %v1096_v1 }
  0x85   :  { %853 = vmatpush3.bf16.msra.mxu0 %v959_v62 }
  0x86   :  { %854 = vmatprep.subr.bf16.mxu0 %v1096_v1 }
  0x89   :  { %855 = vmatpush3.bf16.msra.mxu0 %v960_v63 }
  0x8a   :  { %880 = vmatprep.subr.bf16.mxu0 %v1096_v1 }
 0x13f   :  { %v233_v40 = vpop.f32.mrb[0].mxu0 }
 0x140   :  { %v234_v41 = vadd.f32 %v233_v40, %v106_v38  ;;  %v235_v42 = vpop.f32.mrb[1].mxu0 }
 0x141   :  { %v236_v43 = vadd.f32 %v235_v42, %v110_v39  ;;  %v237_v44 = vpop.f32.mrb[2].mxu0 }
 0x142   :  { %v238_v45 = vadd.f32 %v237_v44, %v106_v38  ;;  %v239_v46 = vpop.f32.mrb[3].mxu0  ;;  %v242_v48 = vmax.f32 %v234_v41, 0.0 }
 0x143   :  { %v240_v47 = vadd.f32 %v239_v46, %v110_v39  ;;  %v243_v50 = vmax.f32 %v236_v43, 0.0 }
 0x144   :  { %v244_v49 = vmax.f32 %v238_v45, 0.0 }
 0x145   :  { %v245_v51 = vmax.f32 %v240_v47, 0.0 }
 0x146   :  { %v246_v53 = vpack.c.bf16 %v244_v49, %v242_v48 }
 0x147   :  { %v474_v54 = vpack.c.bf16 %v245_v51, %v243_v50 }
 0x148   :  { %837 = vmatmul.mubr.bf16.vlgmr.msra.gmra.mrb[0].mxu1 %v246_v53 }
 0x149   :  { %861 = vmatpush3.bf16.msra.mxu1 %v945_v52  ;;  %876 = vmatprep.mubr.msk.bf16.mxu1 %vm1097_vm0, %v1096_v1 }
 0x14a   :  { %862 = vmatprep.subr.bf16.mxu1 %v1096_v1 }
 0x14d   :  { %863 = vmatpush3.bf16.msra.mxu1 %v946_v55 }
 0x14e   :  { %864 = vmatprep.subr.bf16.mxu1 %v1096_v1 }
 0x151   :  { %865 = vmatpush3.bf16.msra.mxu1 %v947_v56 }
 0x152   :  { %866 = vmatprep.subr.bf16.mxu1 %v1096_v1 }
 0x155   :  { %867 = vmatpush3.bf16.msra.mxu1 %v948_v57 }
 0x156   :  { %868 = vmatprep.subr.bf16.mxu1 %v1096_v1 }
 0x159   :  { %869 = vmatpush3.bf16.msra.mxu1 %v949_v58 }
 0x15a   :  { %870 = vmatprep.subr.bf16.mxu1 %v1096_v1 }
 0x15d   :  { %871 = vmatpush3.bf16.msra.mxu1 %v950_v59 }
 0x15e   :  { %872 = vmatprep.subr.bf16.mxu1 %v1096_v1 }
 0x161   :  { %873 = vmatpush3.bf16.msra.mxu1 %v951_v60 }
 0x162   :  { %874 = vmatprep.subr.bf16.mxu1 %v1096_v1 }
 0x165   :  { %875 = vmatpush3.bf16.msra.mxu1 %v952_v61 }
 0x168   :  { %877 = vmatmul.mubr.bf16.vlgmr.msra.gmra.mrb[4].mxu1 %v474_v54 }
 0x21b   :  { %v352_v2 = vpop.f32.mrb[0].mxu1 }
 0x21c   :  { %v353_v3 = vadd.f32 %v746_v0, %v352_v2  ;;  %v838_v4 = vpop.f32.mrb[1].mxu1 }
 0x21d   :  { %v355_v5 = vpop.f32.mrb[2].mxu1 }
 0x21e   :  { %v356_v6 = vadd.f32 %v746_v0, %v355_v5  ;;  %v839_v7 = vpop.f32.mrb[3].mxu1  ;;  %v359_v8 = vmax.f32 %v353_v3, 0.0 }
 0x220   :  { %v360_v9 = vmax.f32 %v356_v6, 0.0 }
 0x222   :  { %v361_v11 = vpack.c.bf16 %v360_v9, %v359_v8 }
 0x224   :  { %857 = vmatmul.mubr.bf16.vlgmr.msra.gmra.mrb[4].mxu0 %v361_v11 }
 0x225   :  { %881 = vmatpush3.bf16.msra.mxu0 %v961_v10  ;;  %896 = vmatprep.mubr.msk.bf16.mxu0 %vm1097_vm0, %v1096_v1 }
 0x226   :  { %882 = vmatprep.subr.bf16.mxu0 %v1096_v1 }
 0x229   :  { %883 = vmatpush3.bf16.msra.mxu0 %v962_v12 }
 0x22a   :  { %884 = vmatprep.subr.bf16.mxu0 %v1096_v1 }
 0x22d   :  { %885 = vmatpush3.bf16.msra.mxu0 %v963_v13 }
 0x22e   :  { %886 = vmatprep.subr.bf16.mxu0 %v1096_v1 }
 0x231   :  { %887 = vmatpush3.bf16.msra.mxu0 %v964_v14 }
 0x232   :  { %888 = vmatprep.subr.bf16.mxu0 %v1096_v1 }
 0x235   :  { %889 = vmatpush3.bf16.msra.mxu0 %v965_v15 }
 0x236   :  { %890 = vmatprep.subr.bf16.mxu0 %v1096_v1 }
 0x239   :  { %891 = vmatpush3.bf16.msra.mxu0 %v966_v16 }
 0x23a   :  { %892 = vmatprep.subr.bf16.mxu0 %v1096_v1 }
 0x23b   :  { %v582_v19 = vpop.f32.mrb[4].mxu1 }
 0x23c   :  { %v583_v20 = vadd.f32 %v765_v17, %v582_v19  ;;  %v878_v21 = vpop.f32.mrb[5].mxu1 }
 0x23d   :  { %v585_v22 = vpop.f32.mrb[6].mxu1  ;;  %893 = vmatpush3.bf16.msra.mxu0 %v967_v18 }
 0x23e   :  { %v586_v24 = vadd.f32 %v765_v17, %v585_v22  ;;  %v879_v25 = vpop.f32.mrb[7].mxu1  ;;  %894 = vmatprep.subr.bf16.mxu0 %v1096_v1  ;;  %v589_v26 = vmax.f32 %v583_v20, 0.0 }
 0x240   :  { %v590_v27 = vmax.f32 %v586_v24, 0.0 }
 0x241   :  { %895 = vmatpush3.bf16.msra.mxu0 %v968_v23 }
 0x242   :  { %v591_v28 = vpack.c.bf16 %v590_v27, %v589_v26 }
 0x244   :  { %897 = vmatmul.mubr.bf16.vlgmr.msra.gmra.mrb[8].mxu0 %v591_v28 }
 0x2f7   :  { %v467_v29 = vpop.f32.mrb[4].mxu0 }
 0x2f8   :  { %v858_v30 = vpop.f32.mrb[5].mxu0  ;;  %v468_v36 = vadd.f32 %v755_v33, %v467_v29 }
 0x2f9   :  { %v470_v31 = vpop.f32.mrb[6].mxu0 }
 0x2fa   :  { %v859_v32 = vpop.f32.mrb[7].mxu0  ;;  %v471_v39 = vadd.f32 %v755_v33, %v470_v31 }
 0x317   :  { %v699_v35 = vpop.f32.mrb[8].mxu0 }
 0x318   :  { %v700_v1 = vadd.f32 %v775_v34, %v699_v35  ;;  %v898_v37 = vpop.f32.mrb[9].mxu0 }
 0x319   :  { %v702_v38 = vpop.f32.mrb[10].mxu0 }
 0x31a   :  { %v706_v40 = vmin.f32 %v468_v36, %v700_v1  ;;  %v703_v41 = vadd.f32 %v775_v34, %v702_v38  ;;  %v899_v42 = vpop.f32.mrb[11].mxu0 }
 0x31c   :  { %708 = vst [vmem:[#allocation10] sm:$0xff] %v706_v40  ;;  %v707_v43 = vmin.f32 %v471_v39, %v703_v41 }
 0x31e   :  { %709 = vst [vmem:[#allocation10 + $0x8] sm:$0xff] %v707_v43 }
 0x31f   :  { %1068 = shalt.err (!%p1065_p8)
}
 0x320   :  { %s1069_s0 = scalar_lea.hbm %s1283_s7, 256 }
 0x321   :  { %p1070_p9 = scmp.ne.s32.totalorder %s1283_s7, %s1069_s0  ;;  %p1073_p10 = scmp.lt.u32.totalorder %s1069_s0, %s1283_s7 }
 0x323   :  { %p1075_p11 = pnand %p1073_p10, %p1070_p9 }
 0x325   :  { %1078 = shalt.err (!%p1075_p11)
}
 0x326   :  { %721 = dma.vmem_to_hbm [thread:$0]  %s716_s15, 256, %s1283_s7, [#allocation4], %s1088_s11, %s1088_s11, %s1089_s12  }
 0x327   :  { %1085 = dma.done.wait [#allocation4], 256  }
 0x328   :  { %1086 = vsyncadd [#allocation4], 4294967040 }
 0x329   :  { %725 = vsyncpa [#allocation3], 1 }
 0x32a   :  { %726 = vsyncpa [#allocation6], 1 }
 0x32b   :  { %727 = vsyncpa [#allocation9], 1 }
 0x32c   :  { %728 = vsyncpa [#allocation4], 1 }

</bundles_post_ra>
